<compile_context>
chip_gen: v7x
topology: tpu7x:2x2x1
jax: 0.10.0
libtpu: 0.0.40
codegen_flags: <defaults>
</compile_context>

<pallas_src>
import functools

import jax
import jax.numpy as jnp
from jax.experimental import pallas as pl
from jax.experimental.pallas import tpu as pltpu


def _round_up(x, k):
    return ((x + k - 1) // k) * k


@functools.lru_cache(maxsize=None)
def _vmem_budget_bytes():
    """(tile budget, vmem_limit) derived from the chip's physical VMEM."""
    cap = 64 * 1024 * 1024
    try:
        cap = int(getattr(pltpu.get_tpu_info(), "vmem_capacity_bytes", cap))
    except Exception:
        pass  # conservative fallback (treat as 64 MiB, i.e. v7x-sized)
    # ~1/4 of physical for the streaming tiles: ~32 MiB on v5e/v6e (128 MiB
    # physical), ~16 MiB on v7x (64 MiB physical).
    budget = int(min(max(cap // 4, 16 * 1024 * 1024), 48 * 1024 * 1024))
    limit = int(min(cap // 2, budget + 16 * 1024 * 1024))
    return budget, limit


def _choose_tiles(n, m, d, h, budget, max_tile_n=None):
    """Pick phase-1 / phase-2 node-tile sizes for the flat (N, M*D) layout."""
    mdpad = _round_up(m * d, 128)
    mhpad = _round_up(m * h, 128)
    dpad = _round_up(d, 128)
    # Phase 1: 2x z(f32) input buffers + bf16 cast copy + f32 (TILE_N, M*H)
    # activations (+ one extra copy of headroom for the masked branch).
    p1_row = 4 * 2 * mdpad + 2 * mdpad + 4 * 2 * mhpad
    p1_fixed = 2 * mdpad * mhpad + 8 * mhpad        # block-diag W1 (bf16) + bias/acc
    # Phase 2: 2x z(f32) input buffers + 2x out(f32) buffers + f32 accumulator.
    p2_row = 4 * 2 * mdpad + 4 * 2 * dpad + 4 * dpad

    t1 = max(8, ((budget - p1_fixed) // p1_row) // 8 * 8)
    t2 = max(8, (budget // p2_row) // 8 * 8)
    t1, t2 = min(t1, 16384), min(t2, 16384)
    if max_tile_n is not None:
        t1, t2 = min(t1, max_tile_n), min(t2, max_tile_n)
    t1 = n if n <= t1 else t1
    t2 = n if n <= t2 else t2
    return t1, t2


def _phase1_kernel(z_ref, w1_ref, b1_ref, o_ref, *, tile_n, n_valid,
                   tiles_per_group, any_partial):
    """Accumulate sum_n tanh(z[n] @ blockdiag(W1) + b1) into a (1, M*H) row.

    z_ref : (TILE_N, M*D) f32   current node tile (flat meta-path layout)
    w1_ref: (M*D, M*H)   bf16   block-diagonal first projection (resident)
    b1_ref: (1, M*H)     f32    tiled bias (resident)
    o_ref : (1, M*H)     f32    per-group accumulator (resident across N axis)
    """
    i = pl.program_id(1)

    @pl.when(i == 0)
    def _init():
        o_ref[...] = jnp.zeros_like(o_ref)

    # bf16 MXU operands, f32 accumulation.  The zero off-diagonal blocks of the
    # block-diagonal weight make this exactly the M per-meta-path projections.
    zt = z_ref[...].astype(jnp.bfloat16)
    h = jnp.tanh(jnp.dot(zt, w1_ref[...], preferred_element_type=jnp.float32)
                 + b1_ref[...])                                  # (TILE_N, M*H) f32
    s_full = jnp.sum(h, axis=0, keepdims=True)                   # (1, M*H)

    if not any_partial:
        o_ref[...] += s_full
    else:
        g = pl.program_id(0)
        row0 = (g * tiles_per_group + i) * tile_n
        is_full = row0 + tile_n <= n_valid

        @pl.when(is_full)
        def _full():
            o_ref[...] += s_full

        @pl.when(jnp.logical_not(is_full))
        def _partial():
            # Ragged last tile / clamped overflow step: zero the padded rows.
            rows = row0 + jax.lax.broadcasted_iota(jnp.int32, (tile_n, 1), 0)
            hm = jnp.where(rows < n_valid, h, 0.0)
            o_ref[...] += jnp.sum(hm, axis=0, keepdims=True)


def _phase2_kernel(beta_ref, z_ref, o_ref, *, num_mp, feat):
    """out[n, :] = sum_m beta[m] * z[n, m*D:(m+1)*D] for one node tile.

    beta_ref: (M,) f32 in SMEM (pre-materialized scalars)
    z_ref   : (TILE_N, M*D)
    o_ref   : (TILE_N, D)
    """
    zt = z_ref[...]
    acc = beta_ref[0] * zt[:, 0:feat].astype(jnp.float32)
    for m in range(1, num_mp):
        acc = acc + beta_ref[m] * zt[:, m * feat:(m + 1) * feat].astype(jnp.float32)
    o_ref[...] = acc.astype(o_ref.dtype)


@functools.partial(jax.jit, static_argnames=("max_tile_n",))
def semantic_attention(z, w1, b1, w2, *, max_tile_n=None):
    """z: (N, M, D); w1: (D, H); b1: (H,); w2: (H, 1).  Returns (N, D)."""
    N, M, D = z.shape
    H = w1.shape[1]
    MD, MH = M * D, M * H

    if max_tile_n is not None:
        max_tile_n = max(8, (int(max_tile_n) // 8) * 8)

    budget, vmem_limit = _vmem_budget_bytes()
    tile_n1, tile_n2 = _choose_tiles(N, M, D, H, budget, max_tile_n)

    z_flat = z.reshape(N, MD)              # free: z is contiguous in HBM

    # ---- Phase 1: per-meta-path sum of tanh(z W1 + b1) over all nodes. ------
    n_tiles1 = pl.cdiv(N, tile_n1)
    num_groups = 2 if n_tiles1 >= 2 else 1          # keep both v7x TCs busy
    tpg = pl.cdiv(n_tiles1, num_groups)
    any_partial = (num_groups * tpg * tile_n1 != N)
    last_blk = n_tiles1 - 1

    # Block-diagonal first projection (bf16 operands for the MXU) + tiled bias.
    w1_big = jnp.kron(jnp.eye(M, dtype=w1.dtype), w1).astype(jnp.bfloat16)  # (MD, MH)
    b1_big = jnp.tile(b1.astype(jnp.float32), M).reshape(1, MH)

    if num_groups * tpg == n_tiles1:
        z1_map = lambda g, i: (g * tpg + i, 0)
    else:  # odd tile count: clamp the overflow step (its rows are masked out)
        z1_map = lambda g, i: (jnp.minimum(g * tpg + i, last_blk), 0)

    h_sum_groups = pl.pallas_call(
        functools.partial(_phase1_kernel, tile_n=tile_n1, n_valid=N,
                          tiles_per_group=tpg, any_partial=any_partial),
        grid=(num_groups, tpg),
        in_specs=[
            pl.BlockSpec((tile_n1, MD), z1_map),
            pl.BlockSpec((MD, MH), lambda g, i: (0, 0)),
            pl.BlockSpec((1, MH), lambda g, i: (0, 0)),
        ],
        out_specs=pl.BlockSpec((None, 1, MH), lambda g, i: (g, 0, 0)),
        out_shape=jax.ShapeDtypeStruct((num_groups, 1, MH), jnp.float32),
        compiler_params=pltpu.CompilerParams(
            dimension_semantics=("parallel", "arbitrary"),
            vmem_limit_bytes=vmem_limit),
    )(z_flat, w1_big, b1_big)

    # ---- Constant-size epilogue (M x H): project to logits + softmax. -------
    # mean_n(tanh(.)) @ w2 == (sum_n tanh(.) / N) @ w2
    h_mean = h_sum_groups.sum(axis=0).reshape(M, H) / jnp.float32(N)
    logits = h_mean @ w2.astype(jnp.float32)                      # (M, 1)
    beta = jax.nn.softmax(logits, axis=0).reshape(M).astype(jnp.float32)

    # ---- Phase 2: beta-weighted sum over meta-paths, tiled over nodes. ------
    n_tiles2 = pl.cdiv(N, tile_n2)
    out = pl.pallas_call(
        functools.partial(_phase2_kernel, num_mp=M, feat=D),
        grid=(n_tiles2,),
        in_specs=[
            pl.BlockSpec(memory_space=pltpu.MemorySpace.SMEM),    # beta scalars
            pl.BlockSpec((tile_n2, MD), lambda i: (i, 0)),        # z tile
        ],
        out_specs=pl.BlockSpec((tile_n2, D), lambda i: (i, 0)),
        out_shape=jax.ShapeDtypeStruct((N, D), z.dtype),
        compiler_params=pltpu.CompilerParams(
            dimension_semantics=("parallel",),
            vmem_limit_bytes=vmem_limit),
    )(beta, z_flat)
    return out


def semantic_attention_reference(z, w1, b1, w2, *, project_dtype=jnp.float32):
    """Pure-JAX reference.  project_dtype=bfloat16 mirrors the kernel's MXU
    operand precision (f32 accumulation either way)."""
    h = jnp.tanh(jnp.dot(z.astype(project_dtype), w1.astype(project_dtype),
                         preferred_element_type=jnp.float32)
                 + b1[None, None, :].astype(jnp.float32))         # (N, M, H)
    s = h @ w2.astype(jnp.float32)                                # (N, M, 1)
    w = s.mean(0)                                                 # (M, 1)
    beta = jax.nn.softmax(w, axis=0)                              # (M, 1)
    return (beta[None, :, :] * z).sum(1)                          # (N, D)


def _check(N, M, D, H, seed=0, max_tile_n=None):
    key = jax.random.PRNGKey(seed)
    kz, kw1, kb1, kw2 = jax.random.split(key, 4)
    z = jax.random.normal(kz, (N, M, D), dtype=jnp.float32)
    # Linear(D,H) weight stored transposed as (D,H); Linear(H,1) has no bias.
    w1 = jax.random.normal(kw1, (D, H), dtype=jnp.float32) * (1.0 / jnp.sqrt(D))
    b1 = jax.random.normal(kb1, (H,), dtype=jnp.float32) * 0.1
    w2 = jax.random.normal(kw2, (H, 1), dtype=jnp.float32) * (1.0 / jnp.sqrt(H))

    out = jax.block_until_ready(
        semantic_attention(z, w1, b1, w2, max_tile_n=max_tile_n))
    assert out.shape == (N, D), out.shape

    # Tight check vs a reference using the same bf16 MXU operand precision.
    ref_bf = jax.block_until_ready(
        semantic_attention_reference(z, w1, b1, w2, project_dtype=jnp.bfloat16))
    err_bf = float(jnp.max(jnp.abs(out - ref_bf)))
    assert jnp.allclose(out, ref_bf, rtol=2e-3, atol=2e-3), err_bf

    # Loose sanity check vs the full-f32 module semantics (bf16 MXU operands
    # shift beta at the ~1e-3 level; the weighted output stays very close).
    ref_f32 = jax.block_until_ready(semantic_attention_reference(z, w1, b1, w2))
    err_f32 = float(jnp.max(jnp.abs(out - ref_f32)))
    assert jnp.allclose(out, ref_f32, rtol=5e-2, atol=5e-2), err_f32


if __name__ == "__main__":
    # Small shapes consistent with the module: N nodes, M meta-paths, D=in_size, H=hidden.
    _check(N=16, M=4, D=32, H=64, seed=0)
    # Force small tiles: exercises tiling, ragged last tile, odd tile count
    # (clamped overflow step) and the two-group "parallel" phase-1 path.
    _check(N=1000, M=3, D=48, H=72, seed=1, max_tile_n=144)
    # Default generation-aware tile sizes on the larger shape (single big tile).
    _check(N=1000, M=3, D=48, H=72, seed=2)
    print("KERNEL_OK")
</pallas_src>

<mosaic_0001>
module attributes {stable_mosaic.version = 11 : i64} {
  func.func @_phase1_kernel(%arg0: i32, %arg1: i32, %arg2: memref<16x128xf32, #tpu.memory_space<vmem>>, %arg3: memref<128x256xbf16, #tpu.memory_space<vmem>>, %arg4: memref<1x256xf32, #tpu.memory_space<vmem>>, %arg5: memref<1x1x256xf32, #tpu.memory_space<vmem>>) attributes {dimension_semantics = [#tpu.dimension_semantics<parallel>, #tpu.dimension_semantics<arbitrary>], iteration_bounds = array<i64: 1, 1>, scalar_prefetch = 0 : i64, scratch_operands = 0 : i64, tpu.core_type = #tpu.core_type<tc>, window_params = [{transform_indices = @transform_0, window_bounds = array<i64: 16, 128>}, {pipeline_mode = #tpu.pipeline_mode<synchronous>, transform_indices = @transform_1, window_bounds = array<i64: 128, 256>}, {pipeline_mode = #tpu.pipeline_mode<synchronous>, transform_indices = @transform_2, window_bounds = array<i64: 1, 256>}, {transform_indices = @transform_3, window_bounds = array<i64: 1, 1, 256>}]} {
    %c0_i32 = arith.constant 0 : i32
    %0 = arith.cmpi eq, %arg1, %c0_i32 : i32
    %1 = arith.extui %0 : i1 to i32
    %c0_i32_0 = arith.constant 0 : i32
    %2 = arith.cmpi ne, %1, %c0_i32_0 : i32
    scf.if %2 {
      %cst_13 = arith.constant 0.000000e+00 : f32
      %19 = vector.broadcast %cst_13 : f32 to vector<1x256xf32>
      %c0_14 = arith.constant 0 : index
      %c0_15 = arith.constant 0 : index
      %c0_16 = arith.constant 0 : index
      %20 = vector.load %arg5[%c0_14, %c0_15, %c0_16] : memref<1x1x256xf32, #tpu.memory_space<vmem>>, vector<1x1x256xf32>
      %21 = vector.shape_cast %20 : vector<1x1x256xf32> to vector<1x256xf32>
      %22 = vector.shape_cast %19 : vector<1x256xf32> to vector<1x1x256xf32>
      tpu.vector_store %arg5[%c0_14, %c0_15, %c0_16], %22 {strides = array<i32>} : memref<1x1x256xf32, #tpu.memory_space<vmem>>, vector<1x1x256xf32>,
    } else {
    }
    %c0 = arith.constant 0 : index
    %c0_1 = arith.constant 0 : index
    %3 = vector.load %arg2[%c0, %c0_1] : memref<16x128xf32, #tpu.memory_space<vmem>>, vector<16x128xf32>
    %4 = arith.truncf %3 : vector<16x128xf32> to vector<16x128xbf16>
    %c0_2 = arith.constant 0 : index
    %c0_3 = arith.constant 0 : index
    %5 = vector.load %arg3[%c0_2, %c0_3] : memref<128x256xbf16, #tpu.memory_space<vmem>>, vector<128x256xbf16>
    %cst = arith.constant dense<0.000000e+00> : vector<16x256xf32>
    %6 = tpu.matmul %4, %5, %cst {dimension_numbers = #tpu.dot_dimension_numbers<[1], [0], [0], [1], [0, 0, 1, 1], [], []>} : vector<16x128xbf16>, vector<128x256xbf16>, vector<16x256xf32> -> vector<16x256xf32>
    %c0_4 = arith.constant 0 : index
    %c0_5 = arith.constant 0 : index
    %7 = vector.load %arg4[%c0_4, %c0_5] : memref<1x256xf32, #tpu.memory_space<vmem>>, vector<1x256xf32>
    %8 = vector.broadcast %7 : vector<1x256xf32> to vector<16x256xf32>
    %9 = arith.addf %6, %8 : vector<16x256xf32>
    %10 = math.tanh %9 : vector<16x256xf32>
    %cst_6 = arith.constant dense<0.000000e+00> : vector<256xf32>
    %11 = vector.multi_reduction <add>, %10, %cst_6 [0] : vector<16x256xf32> to vector<256xf32>
    %12 = vector.shape_cast %11 : vector<256xf32> to vector<1x256xf32>
    %c0_7 = arith.constant 0 : index
    %c0_8 = arith.constant 0 : index
    %c0_9 = arith.constant 0 : index
    %13 = vector.load %arg5[%c0_7, %c0_8, %c0_9] : memref<1x1x256xf32, #tpu.memory_space<vmem>>, vector<1x1x256xf32>
    %14 = vector.shape_cast %13 : vector<1x1x256xf32> to vector<1x256xf32>
    %15 = arith.addf %14, %12 : vector<1x256xf32>
    %c0_10 = arith.constant 0 : index
    %c0_11 = arith.constant 0 : index
    %c0_12 = arith.constant 0 : index
    %16 = vector.load %arg5[%c0_10, %c0_11, %c0_12] : memref<1x1x256xf32, #tpu.memory_space<vmem>>, vector<1x1x256xf32>
    %17 = vector.shape_cast %16 : vector<1x1x256xf32> to vector<1x256xf32>
    %18 = vector.shape_cast %15 : vector<1x256xf32> to vector<1x1x256xf32>
    tpu.vector_store %arg5[%c0_10, %c0_11, %c0_12], %18 {strides = array<i32>} : memref<1x1x256xf32, #tpu.memory_space<vmem>>, vector<1x1x256xf32>,
    return
  }
  func.func @transform_0(%arg0: i32, %arg1: i32) -> (i32, i32) {
    %c1_i32 = arith.constant 1 : i32
    %0 = arith.muli %arg0, %c1_i32 : i32
    %1 = arith.addi %0, %arg1 : i32
    %c0_i32 = arith.constant 0 : i32
    %c0_i32_0 = arith.constant 0 : i32
    return %1, %c0_i32 : i32, i32
  }
  func.func @transform_1(%arg0: i32, %arg1: i32) -> (i32, i32) {
    %c0_i32 = arith.constant 0 : i32
    %c0_i32_0 = arith.constant 0 : i32
    %c0_i32_1 = arith.constant 0 : i32
    return %c0_i32, %c0_i32_0 : i32, i32
  }
  func.func @transform_2(%arg0: i32, %arg1: i32) -> (i32, i32) {
    %c0_i32 = arith.constant 0 : i32
    %c0_i32_0 = arith.constant 0 : i32
    %c0_i32_1 = arith.constant 0 : i32
    return %c0_i32, %c0_i32_0 : i32, i32
  }
  func.func @transform_3(%arg0: i32, %arg1: i32) -> (i32, i32, i32) {
    %c0_i32 = arith.constant 0 : i32
    %c0_i32_0 = arith.constant 0 : i32
    %c0_i32_1 = arith.constant 0 : i32
    return %arg0, %c0_i32, %c0_i32_0 : i32, i32, i32
  }
}

module attributes {stable_mosaic.version = 11 : i64} {
  func.func @_phase2_kernel(%arg0: i32, %arg1: memref<4xf32, #tpu.memory_space<smem>>, %arg2: memref<16x128xf32, #tpu.memory_space<vmem>>, %arg3: memref<16x32xf32, #tpu.memory_space<vmem>>) attributes {dimension_semantics = [#tpu.dimension_semantics<parallel>], iteration_bounds = array<i64: 1>, scalar_prefetch = 0 : i64, scratch_operands = 0 : i64, tpu.core_type = #tpu.core_type<tc>, window_params = [{transform_indices = @transform_0, window_bounds = array<i64: 4>}, {transform_indices = @transform_1, window_bounds = array<i64: 16, 128>}, {transform_indices = @transform_2, window_bounds = array<i64: 16, 32>}]} {
    %c0 = arith.constant 0 : index
    %c0_0 = arith.constant 0 : index
    %0 = vector.load %arg2[%c0, %c0_0] : memref<16x128xf32, #tpu.memory_space<vmem>>, vector<16x128xf32>
    %c0_1 = arith.constant 0 : index
    %1 = memref.load %arg1[%c0_1] : memref<4xf32, #tpu.memory_space<smem>>
    %2 = vector.extract_strided_slice %0 {offsets = [0, 0], sizes = [16, 32], strides = [1, 1]} : vector<16x128xf32> to vector<16x32xf32>
    %3 = vector.broadcast %1 : f32 to vector<16x32xf32>
    %4 = arith.mulf %3, %2 : vector<16x32xf32>
    %c1 = arith.constant 1 : index
    %5 = memref.load %arg1[%c1] : memref<4xf32, #tpu.memory_space<smem>>
    %6 = vector.extract_strided_slice %0 {offsets = [0, 32], sizes = [16, 32], strides = [1, 1]} : vector<16x128xf32> to vector<16x32xf32>
    %7 = vector.broadcast %5 : f32 to vector<16x32xf32>
    %8 = arith.mulf %7, %6 : vector<16x32xf32>
    %9 = arith.addf %4, %8 : vector<16x32xf32>
    %c2 = arith.constant 2 : index
    %10 = memref.load %arg1[%c2] : memref<4xf32, #tpu.memory_space<smem>>
    %11 = vector.extract_strided_slice %0 {offsets = [0, 64], sizes = [16, 32], strides = [1, 1]} : vector<16x128xf32> to vector<16x32xf32>
    %12 = vector.broadcast %10 : f32 to vector<16x32xf32>
    %13 = arith.mulf %12, %11 : vector<16x32xf32>
    %14 = arith.addf %9, %13 : vector<16x32xf32>
    %c3 = arith.constant 3 : index
    %15 = memref.load %arg1[%c3] : memref<4xf32, #tpu.memory_space<smem>>
    %16 = vector.extract_strided_slice %0 {offsets = [0, 96], sizes = [16, 32], strides = [1, 1]} : vector<16x128xf32> to vector<16x32xf32>
    %17 = vector.broadcast %15 : f32 to vector<16x32xf32>
    %18 = arith.mulf %17, %16 : vector<16x32xf32>
    %19 = arith.addf %14, %18 : vector<16x32xf32>
    %c0_2 = arith.constant 0 : index
    %c0_3 = arith.constant 0 : index
    %20 = vector.load %arg3[%c0_2, %c0_3] : memref<16x32xf32, #tpu.memory_space<vmem>>, vector<16x32xf32>
    tpu.vector_store %arg3[%c0_2, %c0_3], %19 {strides = array<i32>} : memref<16x32xf32, #tpu.memory_space<vmem>>, vector<16x32xf32>,
    return
  }
  func.func @transform_0(%arg0: i32) -> i32 {
    %c0_i32 = arith.constant 0 : i32
    %c0_i32_0 = arith.constant 0 : i32
    return %c0_i32 : i32
  }
  func.func @transform_1(%arg0: i32) -> (i32, i32) {
    %c0_i32 = arith.constant 0 : i32
    %c0_i32_0 = arith.constant 0 : i32
    return %arg0, %c0_i32 : i32, i32
  }
  func.func @transform_2(%arg0: i32) -> (i32, i32) {
    %c0_i32 = arith.constant 0 : i32
    %c0_i32_0 = arith.constant 0 : i32
    return %arg0, %c0_i32 : i32, i32
  }
}

</mosaic_0001>

<bundles_post_ra>
// kernel: tile.9
= control target key start
LH: loop header
LB: loop body
LE: loop exit
PB: predicated region body
PF: predicated region fallthrough
CT: control target
= control target key end

     0   :  { %s6_s8 = smov 3  ;;  %vm8_vm0 = vcmask 523264   ;;  %s30_s9 = smov 64   ;;  %vm15_vm1 = vcmask 1048064   ;;  %s50_s0 = inlined_call_operand.vmem [shape: f32[4,64], index: 0, kind: input, shape index: {}]   ;;  %s51_s1 = inlined_call_operand.vmem [shape: f32[1,256], index: 1, kind: output, shape index: {}]  }
   0x1   :  { %v4_v0 = vld [vmem:[%s50_s0] sm:$0xf]  ;;  %s11_s0 = smov 3 }
   0x2   :  { %5 = vst [vmem:[#allocation1] sm:$0xf] %v4_v0 }
   0x9   :  { %v12_v1 = vld [vmem:[#allocation1 + $0x1] ss:$2 sm:%s11_s0]   ;;  %v7_v2 = vld [vmem:[#allocation1] ss:$2 sm:%s6_s8]  }
   0xa   :  { %13 = vrot.lane.b32.xlu0 %v12_v1, %s30_s9  ;;  %9 = vst.msk [vmem:[#allocation0] ss:$8 sm:$0x3] %vm8_vm0, %v7_v2  }
  0x7c   :  { %v14_v3 = vpop.permute.xlu0 %13  }
  0x7d   :  { %16 = vst.msk [vmem:[#allocation0] ss:$8 sm:$0x3] %vm15_vm1, %v14_v3  }
  0x84   :  { %v20_v4 = vld [vmem:[#allocation0] sm:$0x1]  ;;  %v24_v5 = vld [vmem:[#allocation0 + $0x8] sm:$0x1] }
  0x85   :  { %22 = vst [vmem:[%s51_s1] sm:$0x1] %v20_v4  ;;  %28 = vst [vmem:[%s51_s1 + $0x1] sm:$0x1] %v24_v5 }

// kernel: tile.8
= control target key start
LH: loop header
LB: loop body
LE: loop exit
PB: predicated region body
PF: predicated region fallthrough
CT: control target
= control target key end

     0   :  { %s22_s0 = inlined_call_operand.vmem [shape: f32[64], index: 0, kind: input, shape index: {}]   ;;  %s23_s1 = inlined_call_operand.vmem [shape: f32[4,64], index: 1, kind: output, shape index: {}]  }
   0x1   :  { %v4_v0 = vld [vmem:[%s22_s0] ss:$0 sm:$0xff] }
   0x2   :  { %5 = vst [vmem:[%s23_s1] sm:$0xf] %v4_v0 }

// kernel: semantic_attention.3
= control target key start
LH: loop header
LB: loop body
LE: loop exit
PB: predicated region body
PF: predicated region fallthrough
CT: control target
= control target key end

     0   :  { %7 = vsyncpa [#allocation4], 0  ;;  %s184_s0 = inlined_call_operand.vmem [shape: f32[4], index: 0, kind: input, shape index: {}]   ;;  %s185_s1 = inlined_call_operand.vmem [shape: f32[16,128], index: 1, kind: input, shape index: {}]   ;;  %s186_s2 = inlined_call_operand.hbm [shape: f32[16,32], index: 2, kind: output, shape index: {}]  }
   0x1   :  { %8 = vsyncpa [#allocation3], 0  ;;  %s15_s11 = sshll.u32 %s184_s0, 4  ;;  %s16_s11 = int_to_ptr.vmem [resolvable:$true] %s15_s11 }
   0x2   :  { %s103_s12 = scalar_lea.vmem %s16_s11, 16  ;;  %p108_p1 = scmp.lt.s32.totalorder %s16_s11, %s16_s11 }
   0x3   :  { %p104_p0 = scmp.ne.s32.totalorder %s16_s11, %s103_s12  ;;  %p109_p2 = scmp.lt.s32.totalorder %s103_s12, %s103_s12 }
   0x5   :  { %p110_p3 = por %p109_p2, %p108_p1 }
   0x7   :  { %p111_p4 = pnand %p110_p3, %p104_p0 }
   0x9   :  { %114 = shalt.err (!%p111_p4)
}
   0xa   :  { %s141_s13 = smov [#allocation2]  }
   0xb   :  { %18 = dma.vmem_to_smem %s16_s11, 16, %s141_s13, [#allocation4]  }
   0xc   :  { %137 = dma.done.wait [#allocation4], 16  }
   0xd   :  { %138 = vsyncadd [#allocation4], 4294967280 }
   0xe   :  { %24 = sfence }
   0xf   :  { %s94_s14 = sld [smem:[#allocation2 + $0x2]]  ;;  %s93_s15 = sld [smem:[#allocation2 + $0x1]]  ;;  %v25_v0 = vld [vmem:[%s185_s1] sm:$0xff]  ;;  %v26_v1 = vld [vmem:[%s185_s1 + $0x8] sm:$0xff]  ;;  %vm73_vm0 = vcmask 261120  }
  0x10   :  { %s95_s16 = sld [smem:[#allocation2 + $0x3]]  ;;  %s142_s20 = smov 64  }
  0x11   :  { %s143_s21 = smov 96   ;;  %s144_s22 = smov 32  }
  0x12   :  { %s27_s23 = sld [smem:[#allocation2]]  ;;  %s145_s1 = smov [#allocation5]  }
  0x13   :  { %s81_s24 = sshll.u32 %s145_s1, 4  ;;  %s82_s24 = int_to_ptr.vmem [resolvable:$true] %s81_s24 }
  0x14   :  { %s115_s25 = scalar_lea.vmem %s82_s24, 256  ;;  %p120_p6 = scmp.lt.s32.totalorder %s82_s24, %s82_s24 }
  0x15   :  { %v46_v2 = vstv %s94_s14  ;;  %v32_v4 = vstv %s93_s15  ;;  %p116_p5 = scmp.ne.s32.totalorder %s82_s24, %s115_s25  ;;  %p121_p7 = scmp.lt.s32.totalorder %s115_s25, %s115_s25 }
  0x16   :  { %v47_v3 = vmul.f32 %v46_v2, %v25_v0  ;;  %v33_v5 = vmul.f32 %v32_v4, %v25_v0  ;;  %v48_v6 = vmul.f32 %v46_v2, %v26_v1  ;;  %v34_v7 = vmul.f32 %v32_v4, %v26_v1 }
  0x17   :  { %v60_v8 = vstv %s95_s16  ;;  %p122_p8 = por %p121_p7, %p120_p6 }
  0x18   :  { %51 = vrot.lane.b32.xlu1 %v47_v3, %s142_s20  ;;  %37 = vrot.lane.b32.xlu0 %v33_v5, %s143_s21  ;;  %v62_v9 = vmul.f32 %v60_v8, %v26_v1  ;;  %v61_v10 = vmul.f32 %v60_v8, %v25_v0  ;;  %v28_v11 = vstv %s27_s23 }
  0x19   :  { %v29_v13 = vmul.f32 %v28_v11, %v25_v0  ;;  %v30_v15 = vmul.f32 %v28_v11, %v26_v1  ;;  %p123_p9 = pnand %p122_p8, %p116_p5 }
  0x1c   :  { %53 = vrot.lane.b32.xlu1 %v48_v6, %s142_s20  ;;  %39 = vrot.lane.b32.xlu0 %v34_v7, %s143_s21 }
  0x20   :  { %67 = vrot.lane.b32.xlu1 %v62_v9, %s144_s22  ;;  %65 = vrot.lane.b32.xlu0 %v61_v10, %s144_s22 }
  0x8a   :  { %v52_v12 = vpop.permute.xlu1 %51  ;;  %v38_v14 = vpop.permute.xlu0 %37 }
  0x8b   :  { %v43_v16 = vadd.f32 %v38_v14, %v29_v13 }
  0x8d   :  { %v57_v22 = vadd.f32 %v52_v12, %v43_v16 }
  0x8e   :  { %v54_v17 = vpop.permute.xlu1 %53  ;;  %v40_v18 = vpop.permute.xlu0 %39 }
  0x8f   :  { %v44_v19 = vadd.f32 %v40_v18, %v30_v15 }
  0x91   :  { %v58_v21 = vadd.f32 %v54_v17, %v44_v19 }
  0x92   :  { %v68_v20 = vpop.permute.xlu1 %67  ;;  %v66_v23 = vpop.permute.xlu0 %65 }
  0x93   :  { %v72_v24 = vadd.f32 %v68_v20, %v58_v21  ;;  %v71_v25 = vadd.f32 %v66_v23, %v57_v22 }
  0x95   :  { %75 = vst.msk [vmem:[#allocation5 + $0x8] sm:$0xff] %vm73_vm0, %v72_v24  ;;  %74 = vst.msk [vmem:[#allocation5] sm:$0xff] %vm73_vm0, %v71_v25 }
  0x96   :  { %126 = shalt.err (!%p123_p9)
}
  0x97   :  { %s127_s28 = scalar_lea.hbm %s186_s2, 256 }
  0x98   :  { %p128_p10 = scmp.ne.s32.totalorder %s186_s2, %s127_s28  ;;  %p131_p11 = scmp.lt.u32.totalorder %s127_s28, %s186_s2 }
  0x9a   :  { %p133_p12 = pnand %p131_p11, %p128_p10 }
  0x9c   :  { %136 = shalt.err (!%p133_p12)
}
  0x9d   :  { %s146_s5 = smov 128   ;;  %s147_s6 = smov 8  }
  0x9e   :  { %87 = dma.vmem_to_hbm [thread:$0]  %s82_s24, 256, %s186_s2, [#allocation3], %s146_s5, %s146_s5, %s147_s6  }
  0x9f   :  { %139 = dma.done.wait [#allocation3], 256  }
  0xa0   :  { %140 = vsyncadd [#allocation3], 4294967040 }
  0xa1   :  { %91 = vsyncpa [#allocation3], 1 }
  0xa2   :  { %92 = vsyncpa [#allocation4], 1 }

// kernel: semantic_attention.2
= control target key start
LH: loop header
LB: loop body
LE: loop exit
PB: predicated region body
PF: predicated region fallthrough
CT: control target
= control target key end

     0   :  { %v41_v0 = vlaneseq  ;;  %v304_v2 = vmov 0   ;;  %v305_v6 = vmov 0.0   ;;  %v306_v46 = vmov 1966171168   ;;  %s401_s1 = inlined_call_operand.vmem [shape: bf16[128,256], index: 1, kind: input, shape index: {}]   ;;  %s402_s3 = inlined_call_operand.vmem [shape: f32[1,1,256], index: 3, kind: output, shape index: {}]   ;;  %s403_s0 = inlined_call_operand.vmem [shape: f32[16,128], index: 0, kind: input, shape index: {}]   ;;  %s404_s2 = inlined_call_operand.vmem [shape: f32[1,256], index: 2, kind: input, shape index: {}]  }
   0x1   :  { %v272_v1 = vld [vmem:[%s401_s1 + $0x4] ss:$8 sps:$4 sm:$0xff]   ;;  %189 = vmatprep.mubr.bf16.mxu0 %v304_v2  ;;  %v274_v3 = vld [vmem:[%s401_s1] ss:$8 sps:$4 sm:$0xff]   ;;  %v275_v5 = vld [vmem:[%s401_s1 + $0x14] ss:$8 sps:$4 sm:$0xff]   ;;  %v223_v47 = vunpack.c.l.s4 %v306_v46 }
   0x2   :  { %vm333_vm0 = vcmp.lt.s32.totalorder %v41_v0, 256  ;;  %157 = vmatprep.subr.bf16.mxu0 %v272_v1  ;;  %v277_v7 = vld [vmem:[%s401_s1 + $0x10] ss:$8 sps:$4 sm:$0xff]   ;;  %v278_v8 = vld [vmem:[%s401_s1 + $0x24] ss:$8 sps:$4 sm:$0xff]   ;;  %v68_v23 = vshrl.u32 %v41_v0, 7 }
   0x3   :  { %45 = vst.msk [vmem:[%s402_s3] sm:$0x3] %vm333_vm0, %v305_v6  ;;  %158 = vmatpush1.bf16.msra.mxu0 %v274_v3  ;;  %v280_v9 = vld [vmem:[%s401_s1 + $0x20] ss:$8 sps:$4 sm:$0xff]   ;;  %v281_v10 = vld [vmem:[%s401_s1 + $0x34] ss:$8 sps:$4 sm:$0xff]   ;;  %v224_v52 = vunpack.c.0.s8 %v223_v47 }
   0x4   :  { %159 = vmatprep.subr.bf16.mxu0 %v275_v5  ;;  %v283_v11 = vld [vmem:[%s401_s1 + $0x30] ss:$8 sps:$4 sm:$0xff]   ;;  %v284_v12 = vld [vmem:[%s401_s1 + $0x44] ss:$8 sps:$4 sm:$0xff]   ;;  %v286_v13 = vld [vmem:[%s401_s1 + $0x40] ss:$8 sps:$4 sm:$0xff]  }
   0x5   :  { %v287_v14 = vld [vmem:[%s401_s1 + $0x54] ss:$8 sps:$4 sm:$0xff]   ;;  %v289_v15 = vld [vmem:[%s401_s1 + $0x50] ss:$8 sps:$4 sm:$0xff]   ;;  %v290_v16 = vld [vmem:[%s401_s1 + $0x64] ss:$8 sps:$4 sm:$0xff]   ;;  %v227_v57 = vsub.s32 %v224_v52, %v68_v23 }
   0x6   :  { %v292_v17 = vld [vmem:[%s401_s1 + $0x60] ss:$8 sps:$4 sm:$0xff]   ;;  %v293_v18 = vld [vmem:[%s401_s1 + $0x74] ss:$8 sps:$4 sm:$0xff]   ;;  %v295_v19 = vld [vmem:[%s401_s1 + $0x70] ss:$8 sps:$4 sm:$0xff]  }
   0x7   :  { %160 = vmatpush1.bf16.msra.mxu0 %v277_v7  ;;  %v46_v20 = vld [vmem:[%s403_s0] sm:$0xff]  ;;  %v47_v21 = vld [vmem:[%s403_s0 + $0x8] sm:$0xff]  ;;  %v69_v24 = vsub.s32 0, %v68_v23  ;;  %v73_v26 = vsub.s32 1, %v68_v23 }
   0x8   :  { %161 = vmatprep.subr.bf16.mxu0 %v278_v8  ;;  %v48_v22 = vpack.c.bf16 %v47_v21, %v46_v20  ;;  %v65_v25 = vld [vmem:[%s404_s2] sm:$0x3] }
   0x9   :  { %v70_v27 = vrot.slane %v65_v25, %v69_v24  ;;  %v74_v28 = vrot.slane %v65_v25, %v73_v26 }
   0xa   :  { %v218_v61 = vld [vmem:[%s402_s3] sm:$0x3] }
   0xb   :  { %162 = vmatpush1.bf16.msra.mxu0 %v280_v9 }
   0xc   :  { %163 = vmatprep.subr.bf16.mxu0 %v281_v10 }
   0xf   :  { %164 = vmatpush1.bf16.msra.mxu0 %v283_v11 }
  0x10   :  { %165 = vmatprep.subr.bf16.mxu0 %v284_v12 }
  0x13   :  { %166 = vmatpush1.bf16.msra.mxu0 %v286_v13 }
  0x14   :  { %167 = vmatprep.subr.bf16.mxu0 %v287_v14 }
  0x17   :  { %168 = vmatpush1.bf16.msra.mxu0 %v289_v15 }
  0x18   :  { %169 = vmatprep.subr.bf16.mxu0 %v290_v16 }
  0x1b   :  { %170 = vmatpush1.bf16.msra.mxu0 %v292_v17 }
  0x1c   :  { %171 = vmatprep.subr.bf16.mxu0 %v293_v18 }
  0x1f   :  { %172 = vmatpush1.bf16.msra.mxu0 %v295_v19 }
  0x22   :  { %190 = vmatmul.mubr.bf16.vlgmr.msra.gmra.mrb[0].mxu0 %v48_v22 }
  0xf5   :  { %v191_v29 = vpop.f32.mrb[0].mxu0 }
  0xf6   :  { %v192_v30 = vadd.f32 %v191_v29, %v70_v27  ;;  %v193_v31 = vpop.f32.mrb[1].mxu0 }
  0xf7   :  { %v194_v32 = vadd.f32 %v193_v31, %v74_v28  ;;  %v195_v33 = vpop.f32.mrb[2].mxu0 }
  0xf8   :  { %296 = vtanh.f32 %v192_v30  ;;  %v196_v34 = vadd.f32 %v195_v33, %v70_v27  ;;  %v197_v35 = vpop.f32.mrb[3].mxu0 }
  0xf9   :  { %298 = vtanh.f32 %v194_v32  ;;  %v198_v36 = vadd.f32 %v197_v35, %v74_v28 }
  0xfa   :  { %300 = vtanh.f32 %v196_v34 }
  0xfb   :  { %302 = vtanh.f32 %v198_v36 }
 0x102   :  { %v297_v37 = vpop.eup %296 }
 0x103   :  { %v299_v38 = vpop.eup %298 }
 0x104   :  { %v301_v39 = vpop.eup %300 }
 0x105   :  { %v303_v40 = vpop.eup %302  ;;  %v204_v41 = vadd.f32 %v301_v39, %v297_v37 }
 0x106   :  { %v211_v42 = vadd.f32 %v303_v40, %v299_v38 }
 0x107   :  { %v205_v43 = vrot.slane %v204_v41, 4 }
 0x108   :  { %v212_v44 = vrot.slane %v211_v42, 4 }
 0x109   :  { %v206_v45 = vadd.f32 %v205_v43, %v204_v41 }
 0x10a   :  { %v213_v48 = vadd.f32 %v212_v44, %v211_v42 }
 0x10b   :  { %v207_v49 = vrot.slane %v206_v45, 2 }
 0x10c   :  { %v214_v50 = vrot.slane %v213_v48, 2 }
 0x10d   :  { %v208_v51 = vadd.f32 %v207_v49, %v206_v45 }
 0x10e   :  { %v215_v53 = vadd.f32 %v214_v50, %v213_v48 }
 0x10f   :  { %v209_v54 = vrot.slane %v208_v51, 1 }
 0x110   :  { %v216_v55 = vrot.slane %v215_v53, 1 }
 0x111   :  { %v210_v56 = vadd.f32 %v209_v54, %v208_v51 }
 0x112   :  { %v217_v58 = vadd.f32 %v216_v55, %v215_v53 }
 0x114   :  { %v221_v59 = vcombine.low %v210_v56, %v217_v58 }
 0x116   :  { %v228_v60 = vrot.slane %v221_v59, %v227_v57 }
 0x118   :  { %v235_v62 = vrot.slane %v228_v60, %v227_v57 }
 0x11a   :  { %v237_v63 = vadd.f32 %v235_v62, %v218_v61 }
 0x11c   :  { %242 = vst.msk [vmem:[%s402_s3] sm:$0x3] %vm333_vm0, %v237_v63 }

</bundles_post_ra>
